<compile_context>
chip_gen: v7x
topology: tpu7x:2x2x1
jax: 0.10.0
libtpu: 0.0.40
codegen_flags: <defaults>
</compile_context>

<pallas_src>
import functools

import jax
import jax.numpy as jnp
from jax.experimental import pallas as pl
from jax.experimental.pallas import tpu as pltpu

BN_EPS = 1e-5


# ----------------------------- pass 1 kernel ---------------------------------
def _node_kernel(n_valid,
                 agg_ref, x_ref, hase_ref, eag_ref,
                 w_l_ref, w_r_ref, b_l_ref, w_e_ref, b_e_ref,
                 wao_ref, wae_ref, batt_ref,
                 out_ref, psum_ref, psq_ref):
    f32 = jnp.float32
    tn, c_out = out_ref.shape

    # SAGEConv: lin_l(mean-agg) + lin_r(x)  (two small MXU matmuls, f32 acc)
    out = (jnp.dot(agg_ref[...], w_l_ref[...], preferred_element_type=f32)
           + jnp.dot(x_ref[...], w_r_ref[...], preferred_element_type=f32)
           + b_l_ref[...])

    # edge_transform of the single surviving (last) edge per node
    eat = (jnp.dot(eag_ref[...], w_e_ref[...], preferred_element_type=f32)
           + b_e_ref[...])

    # attention logit = <out[col], w_att_out> + <eat, w_att_edge> + b_att
    # done as VPU multiply + lane reduce (no 1-wide MXU matmul).
    node_score = jnp.sum(out * wao_ref[...], axis=-1, keepdims=True)
    edge_score = jnp.sum(eat * wae_ref[...], axis=-1, keepdims=True)
    aw = jax.nn.sigmoid(node_score + edge_score + batt_ref[...])

    # torch's non-accumulating scatter_ keeps <=1 edge contribution per node
    out = out + hase_ref[...] * (aw * eat)

    # zero padded rows so the BatchNorm statistics are exact
    base = pl.program_id(0) * tn
    rid = jax.lax.broadcasted_iota(jnp.int32, (tn, 1), 0) + base
    out = jnp.where(rid < n_valid, out, 0.0)
    out_ref[...] = out

    # BatchNorm stage 1: per-tile partial sums folded onto 8 sublanes
    psum_ref[...] = jnp.sum(out.reshape(tn // 8, 8, c_out), axis=0)
    psq_ref[...] = jnp.sum((out * out).reshape(tn // 8, 8, c_out), axis=0)


# ----------------------------- pass 2 kernel ---------------------------------
def _bn_relu_kernel(y_ref, scale_ref, shift_ref, o_ref):
    # BN (training-mode batch stats) + 2x residual folded into scale/shift,
    # then ReLU:  relu(y * (2*gamma*inv_std) + (2*beta - mu*2*gamma*inv_std)).
    o_ref[...] = jnp.maximum(y_ref[...] * scale_ref[...] + shift_ref[...], 0.0)


# ------------------------------- wrapper -------------------------------------
@functools.partial(jax.jit, static_argnames=("tile_n_max",))
def sage_conv_with_edge_attr_and_attention(x, edge_index, edge_attr, params, *,
                                           tile_n_max=512):
    """Forward pass.  x:[N,Cin] f32, edge_index:[2,E] i32, edge_attr:[E,Fe] f32."""
    f32 = jnp.float32
    N, c_in = x.shape
    E = edge_index.shape[1]
    c_out = params["w_l"].shape[1]
    f_e = edge_attr.shape[1]
    row, col = edge_index[0], edge_index[1]
    x = x.astype(f32)
    ea = edge_attr.astype(f32)

    # ---- linear-cost graph preprocessing (XLA; no dense NxN / ExN ops) ----
    # SAGEConv 'mean' aggregation as an unsorted segment sum.
    # TODO(synk): fold this scatter-add into the kernel via a CSR / sorted-edge
    # layout so x is streamed through VMEM only once.
    agg_sum = jnp.zeros((N, c_in), f32).at[col].add(x[row])
    deg = jnp.zeros((N, 1), f32).at[col].add(1.0)
    agg = agg_sum / jnp.where(deg > 0, deg, 1.0)

    # last-write-wins index of torch's non-accumulating .scatter_ with
    # duplicate targets, plus the gather of that edge's attributes.
    e_ids = jnp.arange(E, dtype=jnp.int32)
    last_edge = jnp.full((N,), -1, jnp.int32).at[col].max(e_ids)
    has_edge = (last_edge >= 0).astype(f32)[:, None]                 # [N,1]
    ea_last = jnp.take(ea, jnp.maximum(last_edge, 0), axis=0)        # [N,Fe]

    # ---- node tiling (tile up to tile_n_max rows, multiple of 8) ----
    n8 = ((N + 7) // 8) * 8
    tile_n = min(tile_n_max, n8)
    n_pad = ((N + tile_n - 1) // tile_n) * tile_n
    t = n_pad // tile_n
    pn = n_pad - N
    agg_p = jnp.pad(agg, ((0, pn), (0, 0)))
    x_p = jnp.pad(x, ((0, pn), (0, 0)))
    hase_p = jnp.pad(has_edge, ((0, pn), (0, 0)))
    eag_p = jnp.pad(ea_last, ((0, pn), (0, 0)))

    wao = params["w_att_out"].reshape(1, c_out)      # attention weight, out part
    wae = params["w_att_edge"].reshape(1, c_out)     # attention weight, edge part

    cparams = pltpu.CompilerParams(dimension_semantics=("parallel",))
    node_spec = lambda w: pl.BlockSpec((tile_n, w), lambda i: (i, 0))
    full_spec = lambda r, c: pl.BlockSpec((r, c), lambda i: (0, 0))

    # ---- pass 1: node-tiled fused SAGE + attention + partial BN stats ----
    out_pre, psum, psq = pl.pallas_call(
        functools.partial(_node_kernel, N),
        out_shape=(
            jax.ShapeDtypeStruct((n_pad, c_out), f32),
            jax.ShapeDtypeStruct((t * 8, c_out), f32),
            jax.ShapeDtypeStruct((t * 8, c_out), f32),
        ),
        grid=(t,),
        in_specs=[
            node_spec(c_in),                 # agg
            node_spec(c_in),                 # x
            node_spec(1),                    # has_edge mask
            node_spec(f_e),                  # gathered last-edge attr per node
            full_spec(c_in, c_out),          # w_l
            full_spec(c_in, c_out),          # w_r
            full_spec(1, c_out),             # b_l
            full_spec(f_e, c_out),           # w_e
            full_spec(1, c_out),             # b_e
            full_spec(1, c_out),             # w_att_out^T
            full_spec(1, c_out),             # w_att_edge^T
            full_spec(1, 1),                 # b_att
        ],
        out_specs=[
            node_spec(c_out),                                  # pre-BN out
            pl.BlockSpec((8, c_out), lambda i: (i, 0)),        # partial sum
            pl.BlockSpec((8, c_out), lambda i: (i, 0)),        # partial sum sq
        ],
        compiler_params=cparams,
    )(agg_p, x_p, hase_p, eag_p,
      params["w_l"], params["w_r"], params["b_l"],
      params["w_e"], params["b_e"], wao, wae, params["b_att"])

    # ---- BN stage 2 constants (tiny [1,Cout] math, done once) ----
    mu = jnp.sum(psum, axis=0, keepdims=True) / N
    var = jnp.sum(psq, axis=0, keepdims=True) / N - mu * mu
    scale = 2.0 * params["gamma"] * jax.lax.rsqrt(var + BN_EPS)
    shift = 2.0 * params["beta"] - mu * scale

    # ---- pass 2: normalize (+ folded 2x residual) + ReLU ----
    out = pl.pallas_call(
        _bn_relu_kernel,
        out_shape=jax.ShapeDtypeStruct((n_pad, c_out), f32),
        grid=(t,),
        in_specs=[node_spec(c_out), full_spec(1, c_out), full_spec(1, c_out)],
        out_specs=node_spec(c_out),
        compiler_params=cparams,
    )(out_pre, scale, shift)
    return out[:N]


# ------------------------------ parameters -----------------------------------
def init_params(key, c_in, c_out, f_e):
    """Deterministic synthetic parameters matching the torch module's shapes."""
    ks = jax.random.split(key, 8)

    def lin(k, fan_in, shape):
        bound = 1.0 / jnp.sqrt(jnp.asarray(fan_in, jnp.float32))
        return jax.random.uniform(k, shape, jnp.float32, -bound, bound)

    w_att = lin(ks[3], 2 * c_out, (2 * c_out, 1))   # nn.Linear(2*Cout, 1).weight.T
    return dict(
        w_l=lin(ks[0], c_in, (c_in, c_out)),        # SAGEConv.lin_l (bias=True)
        b_l=lin(ks[5], c_in, (1, c_out)),
        w_r=lin(ks[1], c_in, (c_in, c_out)),        # SAGEConv.lin_r (bias=False)
        w_e=lin(ks[2], f_e, (f_e, c_out)),          # edge_transform
        b_e=lin(ks[6], f_e, (1, c_out)),
        w_att_out=w_att[:c_out],                    # attention split: out[col] part
        w_att_edge=w_att[c_out:],                   # attention split: edge part
        b_att=lin(ks[4], 2 * c_out, (1, 1)),
        gamma=jnp.ones((1, c_out), jnp.float32),    # BatchNorm1d.weight
        beta=jnp.zeros((1, c_out), jnp.float32),    # BatchNorm1d.bias
    )


# ------------------------------- reference -----------------------------------
def reference(x, edge_index, edge_attr, params):
    """Pure-JAX reference of the torch forward pass (for sanity check)."""
    row, col = edge_index[0], edge_index[1]
    N, E = x.shape[0], edge_attr.shape[0]
    agg_sum = jnp.zeros((N, x.shape[1]), jnp.float32).at[col].add(x[row])
    cnt = jnp.zeros((N, 1), jnp.float32).at[col].add(1.0)
    agg = agg_sum / jnp.where(cnt > 0, cnt, 1.0)
    out = agg @ params["w_l"] + params["b_l"] + x @ params["w_r"]
    eat = edge_attr @ params["w_e"] + params["b_e"]
    logit = out[col] @ params["w_att_out"] + eat @ params["w_att_edge"] + params["b_att"]
    ec = jax.nn.sigmoid(logit) * eat
    last_edge = jnp.full((N,), -1, jnp.int32).at[col].max(jnp.arange(E, dtype=jnp.int32))
    scat = jnp.where((last_edge >= 0)[:, None], ec[jnp.clip(last_edge, 0)], 0.0)
    out = out + scat
    mu = out.mean(0, keepdims=True)
    var = ((out - mu) ** 2).mean(0, keepdims=True)
    out = (out - mu) / jnp.sqrt(var + BN_EPS) * params["gamma"] + params["beta"]
    return jnp.maximum(2.0 * out, 0.0)


if __name__ == "__main__":
    key = jax.random.PRNGKey(0)
    N, E = 16, 48                     # nodes, edges
    c_in, c_out, f_e = 8, 32, 4       # in_channels, out_channels, edge_attr_dim

    k1, k2, k3, k4 = jax.random.split(key, 4)
    x = jax.random.normal(k1, (N, c_in), jnp.float32)
    edge_index = jax.random.randint(k2, (2, E), 0, N, dtype=jnp.int32)
    edge_attr = jax.random.normal(k3, (E, f_e), jnp.float32)
    params = init_params(k4, c_in, c_out, f_e)

    out = sage_conv_with_edge_attr_and_attention(x, edge_index, edge_attr, params)
    out = jax.block_until_ready(out)

    ref = reference(x, edge_index, edge_attr, params)
    assert out.shape == (N, c_out)
    assert bool(jnp.all(jnp.isfinite(out)))
    err = float(jnp.max(jnp.abs(out - ref)))
    assert jnp.allclose(out, ref, atol=5e-3, rtol=5e-3), err
    print("KERNEL_OK")
</pallas_src>

<mosaic_0001>
module attributes {stable_mosaic.version = 11 : i64} {
  func.func private @main(%arg0: i32) attributes {dimension_semantics = [#tpu.dimension_semantics<core_parallel>], iteration_bounds = array<i64: 2>, tpu.core_type = #tpu.core_type<sc_scalar_subcore>, window_params = []} {
    return
  }
}

module attributes {stable_mosaic.version = 11 : i64} {
  func.func private @main(%arg0: i32) attributes {dimension_semantics = [#tpu.dimension_semantics<core_parallel>], iteration_bounds = array<i64: 2>, tpu.core_type = #tpu.core_type<sc_scalar_subcore>, window_params = []} {
    return
  }
}

module attributes {stable_mosaic.version = 11 : i64} {
  func.func @_node_kernel(%arg0: i32, %arg1: memref<16x8xf32, #tpu.memory_space<vmem>>, %arg2: memref<16x8xf32, #tpu.memory_space<vmem>>, %arg3: memref<16x1xf32, #tpu.memory_space<vmem>>, %arg4: memref<16x4xf32, #tpu.memory_space<vmem>>, %arg5: memref<8x32xf32, #tpu.memory_space<vmem>>, %arg6: memref<8x32xf32, #tpu.memory_space<vmem>>, %arg7: memref<1x32xf32, #tpu.memory_space<vmem>>, %arg8: memref<4x32xf32, #tpu.memory_space<vmem>>, %arg9: memref<1x32xf32, #tpu.memory_space<vmem>>, %arg10: memref<1x32xf32, #tpu.memory_space<vmem>>, %arg11: memref<1x32xf32, #tpu.memory_space<vmem>>, %arg12: memref<1x1xf32, #tpu.memory_space<vmem>>, %arg13: memref<16x32xf32, #tpu.memory_space<vmem>>, %arg14: memref<8x32xf32, #tpu.memory_space<vmem>>, %arg15: memref<8x32xf32, #tpu.memory_space<vmem>>) attributes {dimension_semantics = [#tpu.dimension_semantics<parallel>], iteration_bounds = array<i64: 1>, scalar_prefetch = 0 : i64, scratch_operands = 0 : i64, tpu.core_type = #tpu.core_type<tc>, window_params = [{transform_indices = @transform_0, window_bounds = array<i64: 16, 8>}, {transform_indices = @transform_1, window_bounds = array<i64: 16, 8>}, {transform_indices = @transform_2, window_bounds = array<i64: 16, 1>}, {transform_indices = @transform_3, window_bounds = array<i64: 16, 4>}, {pipeline_mode = #tpu.pipeline_mode<synchronous>, transform_indices = @transform_4, window_bounds = array<i64: 8, 32>}, {pipeline_mode = #tpu.pipeline_mode<synchronous>, transform_indices = @transform_5, window_bounds = array<i64: 8, 32>}, {pipeline_mode = #tpu.pipeline_mode<synchronous>, transform_indices = @transform_6, window_bounds = array<i64: 1, 32>}, {pipeline_mode = #tpu.pipeline_mode<synchronous>, transform_indices = @transform_7, window_bounds = array<i64: 4, 32>}, {pipeline_mode = #tpu.pipeline_mode<synchronous>, transform_indices = @transform_8, window_bounds = array<i64: 1, 32>}, {pipeline_mode = #tpu.pipeline_mode<synchronous>, transform_indices = @transform_9, window_bounds = array<i64: 1, 32>}, {pipeline_mode = #tpu.pipeline_mode<synchronous>, transform_indices = @transform_10, window_bounds = array<i64: 1, 32>}, {pipeline_mode = #tpu.pipeline_mode<synchronous>, transform_indices = @transform_11, window_bounds = array<i64: 1, 1>}, {transform_indices = @transform_12, window_bounds = array<i64: 16, 32>}, {transform_indices = @transform_13, window_bounds = array<i64: 8, 32>}, {transform_indices = @transform_14, window_bounds = array<i64: 8, 32>}]} {
    %c0 = arith.constant 0 : index
    %c0_0 = arith.constant 0 : index
    %0 = vector.load %arg1[%c0, %c0_0] : memref<16x8xf32, #tpu.memory_space<vmem>>, vector<16x8xf32>
    %c0_1 = arith.constant 0 : index
    %c0_2 = arith.constant 0 : index
    %1 = vector.load %arg5[%c0_1, %c0_2] : memref<8x32xf32, #tpu.memory_space<vmem>>, vector<8x32xf32>
    %cst = arith.constant dense<0.000000e+00> : vector<16x32xf32>
    %2 = tpu.matmul %0, %1, %cst {dimension_numbers = #tpu.dot_dimension_numbers<[1], [0], [0], [1], [0, 0, 1, 1], [], []>} : vector<16x8xf32>, vector<8x32xf32>, vector<16x32xf32> -> vector<16x32xf32>
    %c0_3 = arith.constant 0 : index
    %c0_4 = arith.constant 0 : index
    %3 = vector.load %arg2[%c0_3, %c0_4] : memref<16x8xf32, #tpu.memory_space<vmem>>, vector<16x8xf32>
    %c0_5 = arith.constant 0 : index
    %c0_6 = arith.constant 0 : index
    %4 = vector.load %arg6[%c0_5, %c0_6] : memref<8x32xf32, #tpu.memory_space<vmem>>, vector<8x32xf32>
    %cst_7 = arith.constant dense<0.000000e+00> : vector<16x32xf32>
    %5 = tpu.matmul %3, %4, %cst_7 {dimension_numbers = #tpu.dot_dimension_numbers<[1], [0], [0], [1], [0, 0, 1, 1], [], []>} : vector<16x8xf32>, vector<8x32xf32>, vector<16x32xf32> -> vector<16x32xf32>
    %6 = arith.addf %2, %5 : vector<16x32xf32>
    %c0_8 = arith.constant 0 : index
    %c0_9 = arith.constant 0 : index
    %7 = vector.load %arg7[%c0_8, %c0_9] : memref<1x32xf32, #tpu.memory_space<vmem>>, vector<1x32xf32>
    %8 = vector.broadcast %7 : vector<1x32xf32> to vector<16x32xf32>
    %9 = arith.addf %6, %8 : vector<16x32xf32>
    %c0_10 = arith.constant 0 : index
    %c0_11 = arith.constant 0 : index
    %10 = vector.load %arg4[%c0_10, %c0_11] : memref<16x4xf32, #tpu.memory_space<vmem>>, vector<16x4xf32>
    %c0_12 = arith.constant 0 : index
    %c0_13 = arith.constant 0 : index
    %11 = vector.load %arg8[%c0_12, %c0_13] : memref<4x32xf32, #tpu.memory_space<vmem>>, vector<4x32xf32>
    %cst_14 = arith.constant dense<0.000000e+00> : vector<16x32xf32>
    %12 = tpu.matmul %10, %11, %cst_14 {dimension_numbers = #tpu.dot_dimension_numbers<[1], [0], [0], [1], [0, 0, 1, 1], [], []>} : vector<16x4xf32>, vector<4x32xf32>, vector<16x32xf32> -> vector<16x32xf32>
    %c0_15 = arith.constant 0 : index
    %c0_16 = arith.constant 0 : index
    %13 = vector.load %arg9[%c0_15, %c0_16] : memref<1x32xf32, #tpu.memory_space<vmem>>, vector<1x32xf32>
    %14 = vector.broadcast %13 : vector<1x32xf32> to vector<16x32xf32>
    %15 = arith.addf %12, %14 : vector<16x32xf32>
    %c0_17 = arith.constant 0 : index
    %c0_18 = arith.constant 0 : index
    %16 = vector.load %arg10[%c0_17, %c0_18] : memref<1x32xf32, #tpu.memory_space<vmem>>, vector<1x32xf32>
    %17 = vector.broadcast %16 : vector<1x32xf32> to vector<16x32xf32>
    %18 = arith.mulf %9, %17 : vector<16x32xf32>
    %cst_19 = arith.constant dense<0.000000e+00> : vector<16xf32>
    %19 = vector.multi_reduction <add>, %18, %cst_19 [1] : vector<16x32xf32> to vector<16xf32>
    %20 = vector.shape_cast %19 : vector<16xf32> to vector<16x1xf32>
    %c0_20 = arith.constant 0 : index
    %c0_21 = arith.constant 0 : index
    %21 = vector.load %arg11[%c0_20, %c0_21] : memref<1x32xf32, #tpu.memory_space<vmem>>, vector<1x32xf32>
    %22 = vector.broadcast %21 : vector<1x32xf32> to vector<16x32xf32>
    %23 = arith.mulf %15, %22 : vector<16x32xf32>
    %cst_22 = arith.constant dense<0.000000e+00> : vector<16xf32>
    %24 = vector.multi_reduction <add>, %23, %cst_22 [1] : vector<16x32xf32> to vector<16xf32>
    %25 = vector.shape_cast %24 : vector<16xf32> to vector<16x1xf32>
    %26 = arith.addf %20, %25 : vector<16x1xf32>
    %c0_23 = arith.constant 0 : index
    %c0_24 = arith.constant 0 : index
    %27 = vector.load %arg12[%c0_23, %c0_24] : memref<1x1xf32, #tpu.memory_space<vmem>>, vector<1x1xf32>
    %28 = vector.broadcast %27 : vector<1x1xf32> to vector<16x1xf32>
    %29 = arith.addf %26, %28 : vector<16x1xf32>
    %30 = arith.negf %29 : vector<16x1xf32>
    %31 = math.exp %30 : vector<16x1xf32>
    %cst_25 = arith.constant 1.000000e+00 : f32
    %32 = vector.broadcast %cst_25 : f32 to vector<16x1xf32>
    %33 = arith.addf %32, %31 : vector<16x1xf32>
    %34 = arith.divf %32, %33 : vector<16x1xf32>
    %c0_26 = arith.constant 0 : index
    %c0_27 = arith.constant 0 : index
    %35 = vector.load %arg3[%c0_26, %c0_27] : memref<16x1xf32, #tpu.memory_space<vmem>>, vector<16x1xf32>
    %36 = vector.broadcast %34 : vector<16x1xf32> to vector<16x32xf32>
    %37 = arith.mulf %36, %15 : vector<16x32xf32>
    %38 = vector.broadcast %35 : vector<16x1xf32> to vector<16x32xf32>
    %39 = arith.mulf %38, %37 : vector<16x32xf32>
    %40 = arith.addf %9, %39 : vector<16x32xf32>
    %c16_i32 = arith.constant 16 : i32
    %41 = arith.muli %arg0, %c16_i32 : i32
    %42 = tpu.iota {dimensions = array<i32: 0>} : vector<16x1xi32>
    %43 = vector.broadcast %41 : i32 to vector<16x1xi32>
    %44 = arith.addi %42, %43 : vector<16x1xi32>
    %c16_i32_28 = arith.constant 16 : i32
    %45 = vector.broadcast %c16_i32_28 : i32 to vector<16x1xi32>
    %46 = arith.cmpi slt, %44, %45 : vector<16x1xi32>
    %cst_29 = arith.constant 0.000000e+00 : f32
    %47 = vector.shape_cast %46 : vector<16x1xi1> to vector<16x1xi1>
    %48 = vector.broadcast %47 : vector<16x1xi1> to vector<16x32xi1>
    %49 = vector.broadcast %cst_29 : f32 to vector<16x32xf32>
    %50 = arith.select %48, %40, %49 : vector<16x32xi1>, vector<16x32xf32>
    %c0_30 = arith.constant 0 : index
    %c0_31 = arith.constant 0 : index
    %51 = vector.load %arg13[%c0_30, %c0_31] : memref<16x32xf32, #tpu.memory_space<vmem>>, vector<16x32xf32>
    tpu.vector_store %arg13[%c0_30, %c0_31], %50 {strides = array<i32>} : memref<16x32xf32, #tpu.memory_space<vmem>>, vector<16x32xf32>,
    %52 = vector.shape_cast %50 : vector<16x32xf32> to vector<2x8x32xf32>
    %cst_32 = arith.constant dense<0.000000e+00> : vector<8x32xf32>
    %53 = vector.multi_reduction <add>, %52, %cst_32 [0] : vector<2x8x32xf32> to vector<8x32xf32>
    %c0_33 = arith.constant 0 : index
    %c0_34 = arith.constant 0 : index
    %54 = vector.load %arg14[%c0_33, %c0_34] : memref<8x32xf32, #tpu.memory_space<vmem>>, vector<8x32xf32>
    tpu.vector_store %arg14[%c0_33, %c0_34], %53 {strides = array<i32>} : memref<8x32xf32, #tpu.memory_space<vmem>>, vector<8x32xf32>,
    %55 = arith.mulf %50, %50 : vector<16x32xf32>
    %56 = vector.shape_cast %55 : vector<16x32xf32> to vector<2x8x32xf32>
    %cst_35 = arith.constant dense<0.000000e+00> : vector<8x32xf32>
    %57 = vector.multi_reduction <add>, %56, %cst_35 [0] : vector<2x8x32xf32> to vector<8x32xf32>
    %c0_36 = arith.constant 0 : index
    %c0_37 = arith.constant 0 : index
    %58 = vector.load %arg15[%c0_36, %c0_37] : memref<8x32xf32, #tpu.memory_space<vmem>>, vector<8x32xf32>
    tpu.vector_store %arg15[%c0_36, %c0_37], %57 {strides = array<i32>} : memref<8x32xf32, #tpu.memory_space<vmem>>, vector<8x32xf32>,
    return
  }
  func.func @transform_0(%arg0: i32) -> (i32, i32) {
    %c0_i32 = arith.constant 0 : i32
    %c0_i32_0 = arith.constant 0 : i32
    return %arg0, %c0_i32 : i32, i32
  }
  func.func @transform_1(%arg0: i32) -> (i32, i32) {
    %c0_i32 = arith.constant 0 : i32
    %c0_i32_0 = arith.constant 0 : i32
    return %arg0, %c0_i32 : i32, i32
  }
  func.func @transform_2(%arg0: i32) -> (i32, i32) {
    %c0_i32 = arith.constant 0 : i32
    %c0_i32_0 = arith.constant 0 : i32
    return %arg0, %c0_i32 : i32, i32
  }
  func.func @transform_3(%arg0: i32) -> (i32, i32) {
    %c0_i32 = arith.constant 0 : i32
    %c0_i32_0 = arith.constant 0 : i32
    return %arg0, %c0_i32 : i32, i32
  }
  func.func @transform_4(%arg0: i32) -> (i32, i32) {
    %c0_i32 = arith.constant 0 : i32
    %c0_i32_0 = arith.constant 0 : i32
    %c0_i32_1 = arith.constant 0 : i32
    return %c0_i32, %c0_i32_0 : i32, i32
  }
  func.func @transform_5(%arg0: i32) -> (i32, i32) {
    %c0_i32 = arith.constant 0 : i32
    %c0_i32_0 = arith.constant 0 : i32
    %c0_i32_1 = arith.constant 0 : i32
    return %c0_i32, %c0_i32_0 : i32, i32
  }
  func.func @transform_6(%arg0: i32) -> (i32, i32) {
    %c0_i32 = arith.constant 0 : i32
    %c0_i32_0 = arith.constant 0 : i32
    %c0_i32_1 = arith.constant 0 : i32
    return %c0_i32, %c0_i32_0 : i32, i32
  }
  func.func @transform_7(%arg0: i32) -> (i32, i32) {
    %c0_i32 = arith.constant 0 : i32
    %c0_i32_0 = arith.constant 0 : i32
    %c0_i32_1 = arith.constant 0 : i32
    return %c0_i32, %c0_i32_0 : i32, i32
  }
  func.func @transform_8(%arg0: i32) -> (i32, i32) {
    %c0_i32 = arith.constant 0 : i32
    %c0_i32_0 = arith.constant 0 : i32
    %c0_i32_1 = arith.constant 0 : i32
    return %c0_i32, %c0_i32_0 : i32, i32
  }
  func.func @transform_9(%arg0: i32) -> (i32, i32) {
    %c0_i32 = arith.constant 0 : i32
    %c0_i32_0 = arith.constant 0 : i32
    %c0_i32_1 = arith.constant 0 : i32
    return %c0_i32, %c0_i32_0 : i32, i32
  }
  func.func @transform_10(%arg0: i32) -> (i32, i32) {
    %c0_i32 = arith.constant 0 : i32
    %c0_i32_0 = arith.constant 0 : i32
    %c0_i32_1 = arith.constant 0 : i32
    return %c0_i32, %c0_i32_0 : i32, i32
  }
  func.func @transform_11(%arg0: i32) -> (i32, i32) {
    %c0_i32 = arith.constant 0 : i32
    %c0_i32_0 = arith.constant 0 : i32
    %c0_i32_1 = arith.constant 0 : i32
    return %c0_i32, %c0_i32_0 : i32, i32
  }
  func.func @transform_12(%arg0: i32) -> (i32, i32) {
    %c0_i32 = arith.constant 0 : i32
    %c0_i32_0 = arith.constant 0 : i32
    return %arg0, %c0_i32 : i32, i32
  }
  func.func @transform_13(%arg0: i32) -> (i32, i32) {
    %c0_i32 = arith.constant 0 : i32
    %c0_i32_0 = arith.constant 0 : i32
    return %arg0, %c0_i32 : i32, i32
  }
  func.func @transform_14(%arg0: i32) -> (i32, i32) {
    %c0_i32 = arith.constant 0 : i32
    %c0_i32_0 = arith.constant 0 : i32
    return %arg0, %c0_i32 : i32, i32
  }
}

module attributes {stable_mosaic.version = 11 : i64} {
  func.func @_bn_relu_kernel(%arg0: i32, %arg1: memref<16x32xf32, #tpu.memory_space<vmem>>, %arg2: memref<1x32xf32, #tpu.memory_space<vmem>>, %arg3: memref<1x32xf32, #tpu.memory_space<vmem>>, %arg4: memref<16x32xf32, #tpu.memory_space<vmem>>) attributes {dimension_semantics = [#tpu.dimension_semantics<parallel>], iteration_bounds = array<i64: 1>, scalar_prefetch = 0 : i64, scratch_operands = 0 : i64, tpu.core_type = #tpu.core_type<tc>, window_params = [{transform_indices = @transform_0, window_bounds = array<i64: 16, 32>}, {pipeline_mode = #tpu.pipeline_mode<synchronous>, transform_indices = @transform_1, window_bounds = array<i64: 1, 32>}, {pipeline_mode = #tpu.pipeline_mode<synchronous>, transform_indices = @transform_2, window_bounds = array<i64: 1, 32>}, {transform_indices = @transform_3, window_bounds = array<i64: 16, 32>}]} {
    %c0 = arith.constant 0 : index
    %c0_0 = arith.constant 0 : index
    %0 = vector.load %arg1[%c0, %c0_0] : memref<16x32xf32, #tpu.memory_space<vmem>>, vector<16x32xf32>
    %c0_1 = arith.constant 0 : index
    %c0_2 = arith.constant 0 : index
    %1 = vector.load %arg2[%c0_1, %c0_2] : memref<1x32xf32, #tpu.memory_space<vmem>>, vector<1x32xf32>
    %2 = vector.broadcast %1 : vector<1x32xf32> to vector<16x32xf32>
    %3 = arith.mulf %0, %2 : vector<16x32xf32>
    %c0_3 = arith.constant 0 : index
    %c0_4 = arith.constant 0 : index
    %4 = vector.load %arg3[%c0_3, %c0_4] : memref<1x32xf32, #tpu.memory_space<vmem>>, vector<1x32xf32>
    %5 = vector.broadcast %4 : vector<1x32xf32> to vector<16x32xf32>
    %6 = arith.addf %3, %5 : vector<16x32xf32>
    %cst = arith.constant 0.000000e+00 : f32
    %7 = vector.broadcast %cst : f32 to vector<16x32xf32>
    %8 = arith.maximumf %6, %7 : vector<16x32xf32>
    %c0_5 = arith.constant 0 : index
    %c0_6 = arith.constant 0 : index
    %9 = vector.load %arg4[%c0_5, %c0_6] : memref<16x32xf32, #tpu.memory_space<vmem>>, vector<16x32xf32>
    tpu.vector_store %arg4[%c0_5, %c0_6], %8 {strides = array<i32>} : memref<16x32xf32, #tpu.memory_space<vmem>>, vector<16x32xf32>,
    return
  }
  func.func @transform_0(%arg0: i32) -> (i32, i32) {
    %c0_i32 = arith.constant 0 : i32
    %c0_i32_0 = arith.constant 0 : i32
    return %arg0, %c0_i32 : i32, i32
  }
  func.func @transform_1(%arg0: i32) -> (i32, i32) {
    %c0_i32 = arith.constant 0 : i32
    %c0_i32_0 = arith.constant 0 : i32
    %c0_i32_1 = arith.constant 0 : i32
    return %c0_i32, %c0_i32_0 : i32, i32
  }
  func.func @transform_2(%arg0: i32) -> (i32, i32) {
    %c0_i32 = arith.constant 0 : i32
    %c0_i32_0 = arith.constant 0 : i32
    %c0_i32_1 = arith.constant 0 : i32
    return %c0_i32, %c0_i32_0 : i32, i32
  }
  func.func @transform_3(%arg0: i32) -> (i32, i32) {
    %c0_i32 = arith.constant 0 : i32
    %c0_i32_0 = arith.constant 0 : i32
    return %arg0, %c0_i32 : i32, i32
  }
}

</mosaic_0001>

<bundles_post_ra>
// kernel: sage_conv_with_edge_attr_and_attention.3
= control target key start
LH: loop header
LB: loop body
LE: loop exit
PB: predicated region body
PF: predicated region fallthrough
CT: control target
= control target key end

     0   :  { %s132_s0 = inlined_call_operand.vmem [shape: f32[16,32], index: 0, kind: input, shape index: {}]   ;;  %s133_s1 = inlined_call_operand.vmem [shape: f32[1,32], index: 1, kind: input, shape index: {}]   ;;  %s134_s2 = inlined_call_operand.vmem [shape: f32[1,32], index: 2, kind: input, shape index: {}]   ;;  %s135_s3 = inlined_call_operand.hbm [shape: f32[16,32], index: 3, kind: output, shape index: {}]  }
   0x1   :  { %v15_v0 = vld [vmem:[%s132_s0] sm:$0xff]  ;;  %v16_v4 = vld [vmem:[%s132_s0 + $0x8] sm:$0xff] }
   0x2   :  { %v56_v1 = vld [vmem:[%s133_s1] ss:$0 sm:$0xff] }
   0x3   :  { %v57_v2 = vld [vmem:[%s134_s2] ss:$0 sm:$0xff]  ;;  %v24_v3 = vmul.f32 %v56_v1, %v15_v0 }
   0x4   :  { %8 = vsyncpa [#allocation3], 0  ;;  %v25_v5 = vmul.f32 %v56_v1, %v16_v4  ;;  %s85_s20 = smov [#allocation2]   ;;  %vm37_vm0 = vcmask 261120  }
   0x5   :  { %v33_v6 = vadd.f32 %v57_v2, %v24_v3  ;;  %s45_s21 = sshll.u32 %s85_s20, 4  ;;  %s46_s21 = int_to_ptr.vmem [resolvable:$true] %s45_s21 }
   0x6   :  { %v34_v7 = vadd.f32 %v57_v2, %v25_v5  ;;  %s61_s1 = scalar_lea.vmem %s46_s21, 256  ;;  %p66_p1 = scmp.lt.s32.totalorder %s46_s21, %s46_s21 }
   0x7   :  { %v35_v8 = vmax.f32 %v33_v6, 0.0  ;;  %p62_p0 = scmp.ne.s32.totalorder %s46_s21, %s61_s1  ;;  %p67_p2 = scmp.lt.s32.totalorder %s61_s1, %s61_s1 }
   0x8   :  { %v36_v9 = vmax.f32 %v34_v7, 0.0 }
   0x9   :  { %38 = vst.msk [vmem:[#allocation2] sm:$0xff] %vm37_vm0, %v35_v8  ;;  %p68_p3 = por %p67_p2, %p66_p1 }
   0xa   :  { %39 = vst.msk [vmem:[#allocation2 + $0x8] sm:$0xff] %vm37_vm0, %v36_v9 }
   0xb   :  { %p69_p4 = pnand %p68_p3, %p62_p0 }
   0xd   :  { %72 = shalt.err (!%p69_p4)
}
   0xe   :  { %s73_s22 = scalar_lea.hbm %s135_s3, 256 }
   0xf   :  { %p74_p5 = scmp.ne.s32.totalorder %s135_s3, %s73_s22  ;;  %p77_p6 = scmp.lt.u32.totalorder %s73_s22, %s135_s3 }
  0x11   :  { %p79_p7 = pnand %p77_p6, %p74_p5 }
  0x13   :  { %82 = shalt.err (!%p79_p7)
}
  0x14   :  { %s86_s27 = smov 128   ;;  %s87_s28 = smov 8  }
  0x15   :  { %51 = dma.vmem_to_hbm [thread:$0]  %s46_s21, 256, %s135_s3, [#allocation3], %s86_s27, %s86_s27, %s87_s28  }
  0x16   :  { %83 = dma.done.wait [#allocation3], 256  }
  0x17   :  { %84 = vsyncadd [#allocation3], 4294967040 }
  0x18   :  { %55 = vsyncpa [#allocation3], 1 }

// kernel: sage_conv_with_edge_attr_and_attention.2
= control target key start
LH: loop header
LB: loop body
LE: loop exit
PB: predicated region body
PF: predicated region fallthrough
CT: control target
= control target key end

     0   :  { %vm52_vm0 = vcmask 64512   ;;  %vm241_vm1 = vcmask 1043456   ;;  %vm234_vm2 = vcmask 31744   ;;  %vm329_vm3 = vcmask 261120   ;;  %s650_s5 = inlined_call_operand.vmem [shape: f32[8,32], index: 5, kind: input, shape index: {}]   ;;  %s651_s1 = inlined_call_operand.vmem [shape: f32[16,8], index: 1, kind: input, shape index: {}]   ;;  %s652_s4 = inlined_call_operand.vmem [shape: f32[8,32], index: 4, kind: input, shape index: {}]   ;;  %s653_s7 = inlined_call_operand.vmem [shape: f32[4,32], index: 7, kind: input, shape index: {}]   ;;  %s654_s3 = inlined_call_operand.vmem [shape: f32[16,4], index: 3, kind: input, shape index: {}]   ;;  %s655_s0 = inlined_call_operand.vmem [shape: f32[16,8], index: 0, kind: input, shape index: {}]   ;;  %s656_s8 = inlined_call_operand.vmem [shape: f32[1,32], index: 8, kind: input, shape index: {}]   ;;  %s657_s10 = inlined_call_operand.vmem [shape: f32[1,32], index: 10, kind: input, shape index: {}]   ;;  %s658_s6 = inlined_call_operand.vmem [shape: f32[1,32], index: 6, kind: input, shape index: {}]   ;;  %s659_s9 = inlined_call_operand.vmem [shape: f32[1,32], index: 9, kind: input, shape index: {}]   ;;  %s660_s11 = inlined_call_operand.<no memory space> [shape: f32[1,1], index: 11, kind: input, shape index: {}]   ;;  %s661_s2 = inlined_call_operand.vmem [shape: f32[16,1], index: 2, kind: input, shape index: {}]   ;;  %s662_s12 = inlined_call_operand.vmem [shape: f32[16,32], index: 12, kind: output, shape index: {0}]   ;;  %s663_s13 = inlined_call_operand.vmem [shape: f32[8,32], index: 13, kind: output, shape index: {1}]   ;;  %s664_s14 = inlined_call_operand.vmem [shape: f32[8,32], index: 14, kind: output, shape index: {2}]  }
   0x1   :  { %v51_v0 = vld [vmem:[%s650_s5] sm:$0xff]  ;;  %v50_v2 = vld [vmem:[%s651_s1 + $0x8] sm:$0xff]  ;;  %v20_v29 = vstv %s660_s11  ;;  %v492_v30 = vmov 0  }
   0x2   :  { %v49_v1 = vld [vmem:[%s651_s1] sm:$0xff]  ;;  %464 = vmatprep.subr.mxu0 %v51_v0  ;;  %v225_v7 = vld [vmem:[%s654_s3 + $0x8] sm:$0xff]  ;;  %21 = vst [vmem:[#allocation2] sm:$0x1] %v20_v29  ;;  %482 = vset.pattern.permute.xlu0 %v492_v30 }
   0x3   :  { %466 = vmatprep.mubr.msk.f32.mxu0 %vm52_vm0, %v49_v1  ;;  %v48_v3 = vld [vmem:[%s652_s4] sm:$0xff]  ;;  %465 = vmatpush3.msra.mxu0 %v51_v0  ;;  %v47_v8 = vld [vmem:[%s655_s0 + $0x8] sm:$0xff] }
   0x4   :  { %v226_v4 = vld [vmem:[%s653_s7] sm:$0xf]  ;;  %467 = vmatmul.mubr.msk.f32.vlgmr.msra.gmra.mrb[0].mxu0 %vm52_vm0, %v50_v2  ;;  %469 = vmatprep.subr.mxu0 %v48_v3  ;;  %v375_v49 = vld [vmem:[%s661_s2 + $0x8] sm:$0xff] }
   0x5   :  { %474 = vmatprep.subr.msk.mxu1 %vm241_vm1, %v226_v4  ;;  %v224_v5 = vld [vmem:[%s654_s3] sm:$0xff]  ;;  %470 = vmatpush3.msra.mxu0 %v48_v3 }
   0x6   :  { %v46_v6 = vld [vmem:[%s655_s0] sm:$0xff]  ;;  %475 = vmatpush3.msk.msra.mxu1 %vm241_vm1, %v226_v4  ;;  %476 = vmatprep.mubr.msk.f32.mxu1 %vm234_vm2, %v224_v5 }
   0x7   :  { %471 = vmatprep.mubr.msk.f32.mxu0 %vm52_vm0, %v46_v6  ;;  %477 = vmatmul.mubr.msk.f32.vlgmr.msra.gmra.mrb[0].mxu1 %vm234_vm2, %v225_v7  ;;  %v446_v9 = vld [vmem:[%s656_s8] ss:$0 sm:$0xff] }
   0x8   :  { %v451_v13 = vld [vmem:[%s657_s10] ss:$0 sm:$0xff]  ;;  %483 = vset.pattern.permute.xlu1 %v492_v30 }
   0x9   :  { %v445_v15 = vld [vmem:[%s658_s6] ss:$0 sm:$0xff] }
   0xa   :  { %v450_v21 = vld [vmem:[%s659_s9] ss:$0 sm:$0xff] }
   0xb   :  { %v452_v32 = vld [vmem:[#allocation2] ss:$0 sm:$0xff] }
   0xc   :  { %472 = vmatmul.mubr.msk.f32.vlgmr.msra.gmra.mrb[0].mxu0 %vm52_vm0, %v47_v8  ;;  %v374_v48 = vld [vmem:[%s661_s2] sm:$0xff] }
  0xda   :  { %v478_v10 = vpop.f32.mrb[0].mxu1 }
  0xdb   :  { %v604_v11 = vadd.f32 %v478_v10, %v446_v9  ;;  %v311_v12 = vpop.f32.mrb[1].mxu1 }
  0xdc   :  { %v312_v14 = vadd.f32 %v446_v9, %v311_v12 }
  0xdd   :  { %v344_v17 = vmul.f32 %v451_v13, %v604_v11 }
  0xde   :  { %v343_v16 = vmul.f32 %v451_v13, %v312_v14 }
  0xdf   :  { %v473_v18 = vpop.f32.mrb[0].mxu0  ;;  %v348_v24 = vsel %vm329_vm3, %v344_v17, 0.0 }
  0xe0   :  { %v206_v19 = vpop.f32.mrb[1].mxu0  ;;  %v345_v20 = vsel %vm329_vm3, %v343_v16, 0.0  ;;  %v223_v22 = vadd.f32 %v473_v18, %v445_v15 }
  0xe1   :  { %v222_v23 = vadd.f32 %v445_v15, %v206_v19  ;;  %346 = vadd.xlane.f32.xlu1 %v345_v20 }
  0xe2   :  { %v328_v27 = vmul.f32 %v450_v21, %v223_v22 }
  0xe3   :  { %v327_v25 = vmul.f32 %v450_v21, %v222_v23 }
  0xe4   :  { %v333_v28 = vsel %vm329_vm3, %v328_v27, 0.0 }
  0xe5   :  { %349 = vadd.xlane.f32.xlu1 %v348_v24  ;;  %v330_v26 = vsel %vm329_vm3, %v327_v25, 0.0 }
  0xe6   :  { %331 = vadd.xlane.f32.xlu0 %v330_v26 }
  0xea   :  { %334 = vadd.xlane.f32.xlu0 %v333_v28 }
 0x16e   :  { %v347_v31 = vpop.xlane.xlu1 %346 }
 0x172   :  { %v350_v36 = vpop.xlane.xlu1 %349 }
 0x173   :  { %v332_v33 = vpop.xlane.xlu0 %331 }
 0x174   :  { %v351_v34 = vadd.f32 %v347_v31, %v332_v33 }
 0x176   :  { %v360_v35 = vadd.f32 %v452_v32, %v351_v34 }
 0x177   :  { %v335_v37 = vpop.xlane.xlu0 %334 }
 0x178   :  { %v453_v38 = vmul.f32 -1.442695, %v360_v35  ;;  %v352_v39 = vadd.f32 %v350_v36, %v335_v37 }
 0x17a   :  { %484 = vpow2.f32 %v453_v38  ;;  %v361_v40 = vadd.f32 %v452_v32, %v352_v39 }
 0x17c   :  { %v454_v41 = vmul.f32 -1.442695, %v361_v40 }
 0x17e   :  { %486 = vpow2.f32 %v454_v41 }
 0x184   :  { %v485_v42 = vpop.eup %484 }
 0x185   :  { %v368_v43 = vadd.f32 1.0, %v485_v42 }
 0x187   :  { %488 = vrcp.f32 %v368_v43 }
 0x188   :  { %v487_v44 = vpop.eup %486 }
 0x189   :  { %v369_v45 = vadd.f32 1.0, %v487_v44 }
 0x18b   :  { %490 = vrcp.f32 %v369_v45 }
 0x191   :  { %v489_v46 = vpop.eup %488 }
 0x192   :  { %378 = vperm.xlu0 %482, %v489_v46  }
 0x195   :  { %v491_v47 = vpop.eup %490 }
 0x196   :  { %383 = vperm.xlu1 %483, %v491_v47  }
 0x19a   :  { %390 = vperm.xlu1 %483, %v374_v48  }
 0x19e   :  { %395 = vperm.xlu1 %483, %v375_v49  }
 0x211   :  { %v379_v50 = vpop.permute.xlu0 %378 }
 0x212   :  { %v386_v52 = vmul.f32 %v379_v50, %v312_v14 }
 0x215   :  { %v384_v51 = vpop.permute.xlu1 %383 }
 0x216   :  { %v387_v55 = vmul.f32 %v384_v51, %v604_v11 }
 0x219   :  { %v391_v53 = vpop.permute.xlu1 %390 }
 0x21a   :  { %v398_v54 = vmul.f32 %v391_v53, %v386_v52 }
 0x21c   :  { %v400_v56 = vadd.f32 %v398_v54, %v222_v23 }
 0x21d   :  { %v396_v57 = vpop.permute.xlu1 %395 }
 0x21e   :  { %417 = vst.msk [vmem:[%s662_s12] sm:$0xff] %vm329_vm3, %v400_v56  ;;  %v399_v58 = vmul.f32 %v396_v57, %v387_v55  ;;  %v423_v59 = vmul.f32 %v400_v56, %v400_v56  ;;  %v419_v61 = vsel %vm329_vm3, %v400_v56, 0.0 }
 0x220   :  { %v401_v60 = vadd.f32 %v399_v58, %v223_v22  ;;  %v425_v1 = vsel %vm329_vm3, %v423_v59, 0.0 }
 0x222   :  { %418 = vst.msk [vmem:[%s662_s12 + $0x8] sm:$0xff] %vm329_vm3, %v401_v60  ;;  %v420_v62 = vsel %vm329_vm3, %v401_v60, 0.0  ;;  %v424_v63 = vmul.f32 %v401_v60, %v401_v60 }
 0x223   :  { %v421_v0 = vadd.f32 %v420_v62, %v419_v61 }
 0x224   :  { %v426_v2 = vsel %vm329_vm3, %v424_v63, 0.0 }
 0x225   :  { %422 = vst.msk [vmem:[%s663_s13] sm:$0xff] %vm329_vm3, %v421_v0  ;;  %v427_v3 = vadd.f32 %v426_v2, %v425_v1 }
 0x227   :  { %428 = vst.msk [vmem:[%s664_s14] sm:$0xff] %vm329_vm3, %v427_v3 }

</bundles_post_ra>
